<compile_context>
chip_gen: v6e
topology: v6e:2x2x1
jax: 0.10.0
libtpu: 0.0.40
codegen_flags: <defaults>
</compile_context>

<pallas_src>
import functools

import jax
import jax.numpy as jnp
from jax.experimental import pallas as pl
from jax.experimental.pallas import tpu as pltpu


_TILE_BYTES_TARGET = 4 * 1024 * 1024   # >= ~1-4 MiB per tile reaches ~86% of HBM roofline
_BLOCK_BUDGET_FRACTION = 0.55          # 2x(in+out) tiles + one f32 temp must live under this
_VMEM_LIMIT_FRACTION = 0.8


def _device_kind():
    try:
        return jax.devices()[0].device_kind.lower()
    except Exception:
        return ""


def _vmem_capacity_bytes():
    """Per-TensorCore VMEM capacity; generation-aware fallback if the query is unavailable."""
    try:
        return int(pltpu.get_tpu_info().vmem_capacity_bytes)
    except Exception:
        pass
    kind = _device_kind()
    if "v7" in kind:
        return 64 * 1024 * 1024       # v7x: 64 MiB per TC
    return 128 * 1024 * 1024          # v5e / v6e: 128 MiB


def _sublane_multiple(dtype):
    """Row granularity imposed by sublane packing of the dtype."""
    itemsize = jnp.dtype(dtype).itemsize
    return {4: 8, 2: 16, 1: 32}.get(itemsize, 8)


def _pick_block_rows(B, D, dtype, vmem_bytes):
    """Auto block_rows for the full-D path; None if even a minimal tile blows the budget."""
    itemsize = jnp.dtype(dtype).itemsize
    sub = _sublane_multiple(dtype)
    budget = int(vmem_bytes * _BLOCK_BUDGET_FRACTION)
    bytes_per_row = D * (4 * itemsize + 4)          # 2x(in+out) tiles + one f32 temp
    max_rows_budget = budget // max(bytes_per_row, 1)
    if max_rows_budget < min(sub, B):
        return None                                  # too wide -> D-tiled two-pass path
    # cap by per-tile bytes, not a fixed row count: HBM streaming throughput tracks tile size
    max_rows_target = max(_TILE_BYTES_TARGET // max(D * itemsize, 1), sub)
    rows = min(max_rows_budget, max_rows_target)
    if rows >= B:
        return B                                     # full extent is always legal
    return max(sub, (rows // sub) * sub)


def _round_block_rows(block_rows, B, D, dtype, vmem_bytes):
    """Validate / sublane-round / VMEM-clamp a caller-supplied block_rows."""
    itemsize = jnp.dtype(dtype).itemsize
    sub = _sublane_multiple(dtype)
    budget = int(vmem_bytes * _BLOCK_BUDGET_FRACTION)
    max_rows_budget = max(budget // max(D * (4 * itemsize + 4), 1), sub)
    rows = min(int(block_rows), B, max_rows_budget)
    if rows >= B:
        return B
    return max(sub, (rows // sub) * sub)


def _pick_wide_tiles(B, D, dtype):
    """(rows, cols) tiles for the D-tiled two-pass path (requires D % 128 == 0)."""
    itemsize = jnp.dtype(dtype).itemsize
    sub = _sublane_multiple(dtype)
    rows = B if B <= 256 else max(sub, (256 // sub) * sub)
    d_units = D // 128
    target_units = max(1, _TILE_BYTES_TARGET // max(rows * 128 * itemsize, 1))
    cols_units = 1
    for u in range(min(d_units, target_units), 0, -1):
        if d_units % u == 0:                        # keep D exactly divisible (no padded sums)
            cols_units = u
            break
    return rows, cols_units * 128


def _row_axis_semantic(kind, grid_rows):
    # v7x has 2 TensorCores per chip: explicitly shard the batch axis across them.
    if "v7" in kind and grid_rows >= 2:
        return getattr(pltpu, "CORE_PARALLEL", "parallel")
    return "parallel"


# ---------------------------------------------------------------------------
# kernels
# ---------------------------------------------------------------------------

def _normalize_kernel(x_ref, o_ref, *, power, native_scale):
    """Single-pass full-D tile: reduce (f32) + rsqrt/pow (EUP) + scale (VPU)."""
    x = x_ref[...]
    xf = x.astype(jnp.float32)
    if power == 2:
        s = jnp.sum(xf * xf, axis=1, keepdims=True)
        inv = jax.lax.rsqrt(s)                       # EUP slot; replaces sqrt + divide
    else:
        # matches the module exactly (no |x|): odd p on negative sums gives NaN like PyTorch
        s = jnp.sum(xf ** power, axis=1, keepdims=True)
        inv = s ** (-1.0 / power)
    if native_scale:
        o_ref[...] = x * inv.astype(x.dtype)         # bf16 VPU multiply; f32 temp dies at the reduce
    else:
        o_ref[...] = (xf * inv).astype(o_ref.dtype)


def _norm_reduce_kernel(x_ref, inv_ref, acc_ref, *, power):
    """Wide-D pass 1: accumulate sum(x^p) per row across D blocks, emit 1/norm at the end."""
    j = pl.program_id(1)

    @pl.when(j == 0)
    def _():
        acc_ref[...] = jnp.zeros_like(acc_ref)

    xf = x_ref[...].astype(jnp.float32)
    if power == 2:
        acc_ref[...] += jnp.sum(xf * xf, axis=1, keepdims=True)
    else:
        acc_ref[...] += jnp.sum(xf ** power, axis=1, keepdims=True)

    @pl.when(j == pl.num_programs(1) - 1)
    def _():
        if power == 2:
            inv_ref[...] = jax.lax.rsqrt(acc_ref[...])
        else:
            inv_ref[...] = acc_ref[...] ** (-1.0 / power)


def _scale_kernel(x_ref, inv_ref, o_ref, *, native_scale):
    """Wide-D pass 2: out = x * (1/norm)."""
    inv = inv_ref[...]
    if native_scale:
        o_ref[...] = x_ref[...] * inv.astype(o_ref.dtype)
    else:
        o_ref[...] = (x_ref[...].astype(jnp.float32) * inv).astype(o_ref.dtype)


# ---------------------------------------------------------------------------
# wrapper
# ---------------------------------------------------------------------------

def normalize(x, power=2, block_rows=None, d_block=None):
    """Pallas L_p normalize over dim=1 for a (B, D) input (PyTorch `Normalize.forward`)."""
    B, D = x.shape
    dtype = x.dtype
    itemsize = jnp.dtype(dtype).itemsize
    sub = _sublane_multiple(dtype)

    kind = _device_kind()
    vmem_bytes = _vmem_capacity_bytes()
    vmem_limit = min(int(vmem_bytes * _VMEM_LIMIT_FRACTION), 110 * 1024 * 1024)
    # scale in the native dtype on chips with bf16 VALUs (v6e/v7x); v5e keeps the f32 multiply
    native_scale = jnp.dtype(dtype).name in ("bfloat16", "float16") and "v5" not in kind

    if d_block is not None:
        if d_block != D and (D % d_block != 0 or d_block % 128 != 0):
            raise ValueError("d_block must equal D or be a multiple of 128 that divides D")
        if d_block == D:
            d_block = None                                   # degenerate: use the flat path

    if d_block is None and block_rows is None:
        block_rows = _pick_block_rows(B, D, dtype, vmem_bytes)
        if block_rows is None:
            if D % 128 == 0:
                block_rows, d_block = _pick_wide_tiles(B, D, dtype)
            else:
                # TODO(synk): D not a multiple of 128 *and* too wide for VMEM has no tiled
                # path; fall back to a minimal full-D row tile and rely on the 0.8 ceiling.
                block_rows = min(B, sub)
    elif d_block is None:
        block_rows = _round_block_rows(block_rows, B, D, dtype, vmem_bytes)
    else:
        if block_rows is None:
            block_rows = _pick_wide_tiles(B, D, dtype)[0]
        else:
            rows = min(int(block_rows), B)
            block_rows = B if rows >= B else max(sub, (rows // sub) * sub)

    grid_rows = pl.cdiv(B, block_rows)
    row_sem = _row_axis_semantic(kind, grid_rows)

    if d_block is None:
        # ---- flat path: full-D row tiles, single pass ----
        cost = pl.CostEstimate(
            flops=3 * B * D,                      # square, reduce-add, scale
            transcendentals=B,                    # one rsqrt / pow per row
            bytes_accessed=2 * B * D * itemsize,  # read x + write out
        )
        return pl.pallas_call(
            functools.partial(_normalize_kernel, power=power, native_scale=native_scale),
            out_shape=jax.ShapeDtypeStruct((B, D), dtype),
            grid_spec=pltpu.PrefetchScalarGridSpec(
                num_scalar_prefetch=0,
                grid=(grid_rows,),
                in_specs=[pl.BlockSpec((block_rows, D), lambda i: (i, 0))],
                out_specs=pl.BlockSpec((block_rows, D), lambda i: (i, 0)),
            ),
            compiler_params=pltpu.CompilerParams(
                dimension_semantics=(row_sem,),
                vmem_limit_bytes=vmem_limit,
            ),
            cost_estimate=cost,
        )(x)

    # ---- D-tiled two-pass path for very wide feature dims ----
    grid_d = D // d_block

    inv = pl.pallas_call(
        functools.partial(_norm_reduce_kernel, power=power),
        out_shape=jax.ShapeDtypeStruct((B, 1), jnp.float32),
        grid_spec=pltpu.PrefetchScalarGridSpec(
            num_scalar_prefetch=0,
            grid=(grid_rows, grid_d),
            in_specs=[pl.BlockSpec((block_rows, d_block), lambda i, j: (i, j))],
            out_specs=pl.BlockSpec((block_rows, 1), lambda i, j: (i, 0)),
            scratch_shapes=[pltpu.VMEM((block_rows, 1), jnp.float32)],
        ),
        compiler_params=pltpu.CompilerParams(
            dimension_semantics=(row_sem, "arbitrary"),
            vmem_limit_bytes=vmem_limit,
        ),
        cost_estimate=pl.CostEstimate(
            flops=2 * B * D, transcendentals=B,
            bytes_accessed=B * D * itemsize + 4 * B),
    )(x)

    return pl.pallas_call(
        functools.partial(_scale_kernel, native_scale=native_scale),
        out_shape=jax.ShapeDtypeStruct((B, D), dtype),
        grid_spec=pltpu.PrefetchScalarGridSpec(
            num_scalar_prefetch=0,
            grid=(grid_rows, grid_d),
            in_specs=[pl.BlockSpec((block_rows, d_block), lambda i, j: (i, j)),
                      pl.BlockSpec((block_rows, 1), lambda i, j: (i, 0))],
            out_specs=pl.BlockSpec((block_rows, d_block), lambda i, j: (i, j)),
        ),
        compiler_params=pltpu.CompilerParams(
            dimension_semantics=(row_sem, "parallel"),
            vmem_limit_bytes=vmem_limit,
        ),
        cost_estimate=pl.CostEstimate(
            flops=B * D, transcendentals=0,
            bytes_accessed=2 * B * D * itemsize + 4 * B),
    )(x, inv)


if __name__ == "__main__":
    key = jax.random.PRNGKey(0)

    # 1) flat (full-D) path, f32
    B, D = 64, 128
    x = jax.random.normal(key, (B, D), dtype=jnp.float32)
    out = jax.block_until_ready(normalize(x, power=2))
    ref = x / jnp.power(jnp.sum(jnp.power(x, 2), axis=1, keepdims=True), 0.5)
    assert out.shape == x.shape and out.dtype == x.dtype
    assert jnp.allclose(out, ref, atol=1e-5, rtol=1e-5)

    # 2) D-tiled two-pass path (forced via d_block) — exercises the VMEM accumulator
    B2, D2 = 64, 256
    x2 = jax.random.normal(jax.random.PRNGKey(0), (B2, D2), dtype=jnp.float32)
    out2 = jax.block_until_ready(normalize(x2, power=2, d_block=128))
    ref2 = x2 / jnp.power(jnp.sum(jnp.power(x2, 2), axis=1, keepdims=True), 0.5)
    assert out2.shape == x2.shape and out2.dtype == x2.dtype
    assert jnp.allclose(out2, ref2, atol=1e-5, rtol=1e-5)

    # 3) bf16 input (native-dtype scale on v6e/v7x, f32 scale on v5e)
    xb = jax.random.normal(jax.random.PRNGKey(1), (64, 128), dtype=jnp.float32).astype(jnp.bfloat16)
    outb = jax.block_until_ready(normalize(xb, power=2))
    xb32 = xb.astype(jnp.float32)
    refb = xb32 / jnp.sqrt(jnp.sum(xb32 * xb32, axis=1, keepdims=True))
    assert outb.shape == xb.shape and outb.dtype == jnp.bfloat16
    assert jnp.allclose(outb.astype(jnp.float32), refb, atol=2e-2, rtol=2e-2)

    print("KERNEL_OK")
</pallas_src>

<mosaic_0001>
module attributes {stable_mosaic.version = 11 : i64} {
  func.func @_normalize_kernel(%arg0: i32, %arg1: memref<64x128xf32, #tpu.memory_space<vmem>>, %arg2: memref<64x128xf32, #tpu.memory_space<vmem>>) attributes {dimension_semantics = [#tpu.dimension_semantics<parallel>], iteration_bounds = array<i64: 1>, scalar_prefetch = 0 : i64, scratch_operands = 0 : i64, tpu.core_type = #tpu.core_type<tc>, window_params = [{transform_indices = @transform_0, window_bounds = array<i64: 64, 128>}, {transform_indices = @transform_1, window_bounds = array<i64: 64, 128>}]} {
    %c0 = arith.constant 0 : index
    %c0_0 = arith.constant 0 : index
    %0 = vector.load %arg1[%c0, %c0_0] : memref<64x128xf32, #tpu.memory_space<vmem>>, vector<64x128xf32>
    %1 = arith.mulf %0, %0 : vector<64x128xf32>
    %cst = arith.constant dense<0.000000e+00> : vector<64xf32>
    %2 = vector.multi_reduction <add>, %1, %cst [1] : vector<64x128xf32> to vector<64xf32>
    %3 = vector.shape_cast %2 : vector<64xf32> to vector<64x1xf32>
    %4 = math.rsqrt %3 : vector<64x1xf32>
    %5 = vector.broadcast %4 : vector<64x1xf32> to vector<64x128xf32>
    %6 = arith.mulf %0, %5 : vector<64x128xf32>
    %c0_1 = arith.constant 0 : index
    %c0_2 = arith.constant 0 : index
    %7 = vector.load %arg2[%c0_1, %c0_2] : memref<64x128xf32, #tpu.memory_space<vmem>>, vector<64x128xf32>
    tpu.vector_store %arg2[%c0_1, %c0_2], %6 {strides = array<i32>} : memref<64x128xf32, #tpu.memory_space<vmem>>, vector<64x128xf32>,
    return
  }
  func.func @transform_0(%arg0: i32) -> (i32, i32) {
    %c0_i32 = arith.constant 0 : i32
    %c0_i32_0 = arith.constant 0 : i32
    return %arg0, %c0_i32 : i32, i32
  }
  func.func @transform_1(%arg0: i32) -> (i32, i32) {
    %c0_i32 = arith.constant 0 : i32
    %c0_i32_0 = arith.constant 0 : i32
    return %arg0, %c0_i32 : i32, i32
  }
}

</mosaic_0001>

<bundles_post_ra>
// kernel: tpu_custom_call.1
= control target key start
LH: loop header
LB: loop body
LE: loop exit
PB: predicated region body
PF: predicated region fallthrough
CT: control target
= control target key end

     0   :  { %6 = vsyncpa [#allocation3], 0  ;;  %s186_s0 = inlined_call_operand.hbm [shape: f32[64,128], index: 0, kind: input, shape index: {}]   ;;  %s187_s1 = inlined_call_operand.hbm [shape: f32[64,128], index: 1, kind: output, shape index: {}]  }
   0x1   :  { %7 = vsyncpa [#allocation4], 0  ;;  %s160_s6 = smov [#allocation2]  }
   0x2   :  { %s13_s7 = sshll.u32 %s160_s6, 4  ;;  %s14_s7 = int_to_ptr.vmem [resolvable:$true] %s13_s7 }
   0x3   :  { %s124_s8 = scalar_lea.vmem %s14_s7, 1024  ;;  %p129_p1 = scmp.lt.s32.totalorder %s14_s7, %s14_s7 }
   0x4   :  { %p125_p0 = scmp.ne.s32.totalorder %s14_s7, %s124_s8  ;;  %p130_p2 = scmp.lt.s32.totalorder %s124_s8, %s124_s8 }
   0x6   :  { %p131_p3 = por %p130_p2, %p129_p1 }
   0x8   :  { %p132_p4 = pnand %p131_p3, %p125_p0 }
   0xa   :  { %135 = shalt.err (!%p132_p4)
}
   0xb   :  { %s161_s9 = smov 128   ;;  %s162_s10 = smov 8  }
   0xc   :  { %19 = dma.hbm_to_vmem [thread:$0]  %s186_s0, 1024, %s14_s7, [#allocation3], %s161_s9, %s161_s9, %s162_s10  }
   0xd   :  { %156 = dma.done.wait [#allocation3], 1024  }
   0xe   :  { %157 = vsyncadd [#allocation3], 4294966272  ;;  %v25_v0 = vld [vmem:[#allocation2 + $0x10] sm:$0xff]  ;;  %v23_v1 = vld [vmem:[#allocation2] sm:$0xff]  ;;  %s163_s0 = smov [#allocation5]  }
   0xf   :  { %v26_v2 = vld [vmem:[#allocation2 + $0x18] sm:$0xff]  ;;  %v33_v3 = vmul.f32 %v25_v0, %v25_v0  ;;  %v31_v4 = vmul.f32 %v23_v1, %v23_v1  ;;  %v24_v5 = vld [vmem:[#allocation2 + $0x8] sm:$0xff]  ;;  %v27_v9 = vld [vmem:[#allocation2 + $0x20] sm:$0xff]  ;;  %s84_s13 = sshll.u32 %s163_s0, 4  ;;  %s85_s13 = int_to_ptr.vmem [resolvable:$true] %s84_s13 }
  0x10   :  { %v34_v6 = vmul.f32 %v26_v2, %v26_v2  ;;  %v32_v7 = vmul.f32 %v24_v5, %v24_v5  ;;  %v28_v8 = vld [vmem:[#allocation2 + $0x28] sm:$0xff]  ;;  %v35_v11 = vmul.f32 %v27_v9, %v27_v9  ;;  %v30_v12 = vld [vmem:[#allocation2 + $0x38] sm:$0xff]  ;;  %v29_v13 = vld [vmem:[#allocation2 + $0x30] sm:$0xff]  ;;  %s136_s14 = scalar_lea.vmem %s85_s13, 1024  ;;  %p141_p6 = scmp.lt.s32.totalorder %s85_s13, %s85_s13 }
  0x11   :  { %43 = vadd.xlane.f32.xlu1 %v33_v3  ;;  %39 = vadd.xlane.f32.xlu0 %v31_v4  ;;  %v36_v10 = vmul.f32 %v28_v8, %v28_v8  ;;  %v38_v14 = vmul.f32 %v30_v12, %v30_v12  ;;  %v37_v15 = vmul.f32 %v29_v13, %v29_v13  ;;  %p137_p5 = scmp.ne.s32.totalorder %s85_s13, %s136_s14  ;;  %p142_p7 = scmp.lt.s32.totalorder %s136_s14, %s136_s14 }
  0x13   :  { %p143_p8 = por %p142_p7, %p141_p6 }
  0x15   :  { %45 = vadd.xlane.f32.xlu1 %v34_v6  ;;  %41 = vadd.xlane.f32.xlu0 %v32_v7  ;;  %p144_p9 = pnand %p143_p8, %p137_p5 }
  0x19   :  { %49 = vadd.xlane.f32.xlu1 %v36_v10  ;;  %47 = vadd.xlane.f32.xlu0 %v35_v11 }
  0x1d   :  { %53 = vadd.xlane.f32.xlu1 %v38_v14  ;;  %51 = vadd.xlane.f32.xlu0 %v37_v15 }
  0x9a   :  { %v44_v16 = vpop.xlane.xlu1 %43  ;;  %v40_v17 = vpop.xlane.xlu0 %39 }
  0x9b   :  { %100 = vrsqrt.f32 %v44_v16 }
  0x9c   :  { %102 = vrsqrt.f32 %v40_v17 }
  0x9e   :  { %v46_v18 = vpop.xlane.xlu1 %45  ;;  %v42_v19 = vpop.xlane.xlu0 %41 }
  0x9f   :  { %104 = vrsqrt.f32 %v46_v18 }
  0xa0   :  { %106 = vrsqrt.f32 %v42_v19 }
  0xa2   :  { %v50_v20 = vpop.xlane.xlu1 %49  ;;  %v48_v21 = vpop.xlane.xlu0 %47 }
  0xa3   :  { %108 = vrsqrt.f32 %v50_v20 }
  0xa4   :  { %110 = vrsqrt.f32 %v48_v21 }
  0xa6   :  { %v54_v22 = vpop.xlane.xlu1 %53  ;;  %v52_v23 = vpop.xlane.xlu0 %51 }
  0xa7   :  { %112 = vrsqrt.f32 %v54_v22 }
  0xa8   :  { %v101_v24 = vpop.eup %100  ;;  %114 = vrsqrt.f32 %v52_v23 }
  0xa9   :  { %v103_v25 = vpop.eup %102  ;;  %v65_v26 = vmul.f32 %v101_v24, %v25_v0 }
  0xaa   :  { %v63_v27 = vmul.f32 %v103_v25, %v23_v1 }
  0xab   :  { %73 = vst [vmem:[#allocation5 + $0x10] sm:$0xff] %v65_v26 }
  0xac   :  { %v105_v28 = vpop.eup %104  ;;  %71 = vst [vmem:[#allocation5] sm:$0xff] %v63_v27 }
  0xad   :  { %v107_v29 = vpop.eup %106  ;;  %v66_v30 = vmul.f32 %v105_v28, %v26_v2 }
  0xae   :  { %v64_v31 = vmul.f32 %v107_v29, %v24_v5 }
  0xaf   :  { %74 = vst [vmem:[#allocation5 + $0x18] sm:$0xff] %v66_v30 }
  0xb0   :  { %v109_v32 = vpop.eup %108  ;;  %72 = vst [vmem:[#allocation5 + $0x8] sm:$0xff] %v64_v31 }
  0xb1   :  { %v111_v33 = vpop.eup %110  ;;  %v68_v34 = vmul.f32 %v109_v32, %v28_v8 }
  0xb2   :  { %v67_v35 = vmul.f32 %v111_v33, %v27_v9 }
  0xb3   :  { %76 = vst [vmem:[#allocation5 + $0x28] sm:$0xff] %v68_v34 }
  0xb4   :  { %v113_v36 = vpop.eup %112  ;;  %75 = vst [vmem:[#allocation5 + $0x20] sm:$0xff] %v67_v35 }
  0xb5   :  { %v115_v37 = vpop.eup %114  ;;  %v70_v38 = vmul.f32 %v113_v36, %v30_v12 }
  0xb6   :  { %v69_v39 = vmul.f32 %v115_v37, %v29_v13 }
  0xb7   :  { %78 = vst [vmem:[#allocation5 + $0x38] sm:$0xff] %v70_v38 }
  0xb8   :  { %77 = vst [vmem:[#allocation5 + $0x30] sm:$0xff] %v69_v39 }
  0xb9   :  { %147 = shalt.err (!%p144_p9)
}
  0xba   :  { %90 = dma.vmem_to_hbm [thread:$0]  %s85_s13, 1024, %s187_s1, [#allocation4], %s161_s9, %s161_s9, %s162_s10  }
  0xbb   :  { %158 = dma.done.wait [#allocation4], 1024  }
  0xbc   :  { %159 = vsyncadd [#allocation4], 4294966272 }
  0xbd   :  { %94 = vsyncpa [#allocation3], 1 }
  0xbe   :  { %95 = vsyncpa [#allocation4], 1 }

</bundles_post_ra>
